<compile_context>
chip_gen: v5e
topology: v5e:2x2
jax: 0.10.0
libtpu: 0.0.40
codegen_flags: <defaults>
</compile_context>

<pallas_src>
import numpy as np

import jax
import jax.numpy as jnp
from jax import lax
from jax.experimental import pallas as pl
from jax.experimental.pallas import tpu as pltpu

BN_EPS = 1e-5
LANE = 128


def embedding_dim_rule(size: int) -> int:
    return min(50, (size + 1) // 2)


def _round_up(n: int, m: int) -> int:
    return ((n + m - 1) // m) * m


def _pick_batch_tile(b: int) -> int:
    # 128 is safe on all generations (review: 256 on v6e/v7x, 128 on v5e).
    for tb in (128, 64, 32, 16, 8):
        if b % tb == 0:
            return tb
    return b


def _make_embedding_kernel(tb: int, n_cat: int):
    def kernel(gids_ref, x_ref, table_hbm, cont_sel_ref, scale_ref, shift_ref,
               out_ref, gbuf, gsem):
        base = pl.program_id(0) * tb

        # ---- categorical branch: HBM row gather (only B*n_cat rows move). ----
        # TODO(synk): for very large tiles, bound in-flight DMAs / prefetch the
        # next tile's rows instead of one semaphore per gathered row.
        for j in range(n_cat):
            @pl.loop(0, tb)
            def _(bb, j=j):
                gid = gids_ref[(base + bb) * n_cat + j]
                pltpu.make_async_copy(
                    table_hbm.at[pl.ds(gid, 1), :],
                    gbuf.at[j, pl.ds(bb, 1), :],
                    gsem.at[j, bb],
                ).start()

        # ---- continuous branch (overlaps the gather DMAs) ----
        # x @ cont_sel scatters continuous columns into their output lanes;
        # BN statistics are hoisted to the wrapper -> single FMA here.
        xc = jnp.dot(x_ref[...], cont_sel_ref[...],
                     preferred_element_type=jnp.float32)          # (tb, OUT_PAD)
        bn = xc * scale_ref[...] + shift_ref[...]

        # ---- wait for the gathers ----
        for j in range(n_cat):
            @pl.loop(0, tb)
            def _(bb, j=j):
                pltpu.make_async_copy(
                    table_hbm.at[pl.ds(0, 1), :],
                    gbuf.at[j, pl.ds(bb, 1), :],
                    gsem.at[j, bb],
                ).wait()

        # Gathered rows are block-diagonal in the output lanes, so summing the
        # per-categorical-column slabs reassembles the concatenation exactly.
        emb = gbuf[0]
        for j in range(1, n_cat):
            emb = emb + gbuf[j]

        # TODO(synk): nn.Dropout (training mode) uses torch's RNG; its exact
        # mask cannot be reproduced here, so dropout is applied as identity.

        # Single lane-dense, full-width (TB, OUT_PAD=128) store.
        out_ref[...] = emb + bn

    return kernel


def embedding_forward(x, emb_tables, gamma, beta, cat_idxes, cont_idxes,
                      *, block_b=None):
    """Builds padded static operands, single batch-tiled pallas_call, slices back."""
    b, input_length = x.shape
    n_cat = len(cat_idxes)
    n_cont = len(cont_idxes)
    cat_sizes = [int(t.shape[0]) for t in emb_tables]
    cat_dims = [int(t.shape[1]) for t in emb_tables]
    total_cat_dim = sum(cat_dims)
    out_dim = total_cat_dim + n_cont
    out_pad = _round_up(out_dim, LANE)

    # Stacked block-diagonal table -- stays in HBM, rows gathered by DMA.
    # TODO(synk): store as bf16 (f32 accumulate) to halve HBM traffic if ~1e-3
    # relative error on embedding values is acceptable.
    v_total = sum(cat_sizes)
    table_pad = np.zeros((v_total, out_pad), np.float32)
    v_offs = []
    v_off, d_off = 0, 0
    for vocab, dim, tbl in zip(cat_sizes, cat_dims, emb_tables):
        table_pad[v_off:v_off + vocab, d_off:d_off + dim] = np.asarray(tbl)
        v_offs.append(v_off)
        v_off += vocab
        d_off += dim

    # Global row ids for the gather, flattened (B*n_cat,) int32 -> SMEM via
    # scalar prefetch (1-D to avoid SMEM 2-D padding blow-up).
    cat_cols = jnp.asarray(list(cat_idxes), jnp.int32)
    gids = (x[:, cat_cols].astype(jnp.int32)
            + jnp.asarray(v_offs, jnp.int32)[None, :]).reshape(-1)

    # Continuous-column selection matrix (scatters into output lanes).
    cont_sel = np.zeros((input_length, out_pad), np.float32)
    for jj, col in enumerate(cont_idxes):
        cont_sel[col, total_cat_dim + jj] = 1.0

    # Hoisted BatchNorm1d training-mode statistics (biased variance), folded
    # into per-output-lane scale/shift; categorical and padded lanes get 0.
    xc = x[:, jnp.asarray(list(cont_idxes), jnp.int32)].astype(jnp.float32)
    mean = jnp.mean(xc, axis=0)
    var = jnp.mean((xc - mean[None, :]) ** 2, axis=0)
    inv_std = lax.rsqrt(var + BN_EPS)
    g = jnp.asarray(gamma, jnp.float32).reshape(-1)
    be = jnp.asarray(beta, jnp.float32).reshape(-1)
    scale_c = g * inv_std
    shift_c = be - mean * scale_c
    scale_pad = jnp.zeros((1, out_pad), jnp.float32
                          ).at[0, total_cat_dim:out_dim].set(scale_c)
    shift_pad = jnp.zeros((1, out_pad), jnp.float32
                          ).at[0, total_cat_dim:out_dim].set(shift_c)

    tb = _pick_batch_tile(b) if block_b is None else int(block_b)
    assert b % tb == 0, "batch must be divisible by the batch tile"
    grid = (b // tb,)

    # Scoped-VMEM budget from the actual per-tile footprint (+ headroom),
    # capped at v7x's 64 MiB physical VMEM. Independent of vocab size.
    tile_bytes = 4 * (2 * tb * input_length          # x tile (double buffered)
                      + 2 * tb * out_pad             # out tile (double buffered)
                      + 2 * input_length * out_pad   # cont_sel
                      + 4 * out_pad                  # scale + shift
                      + n_cat * tb * out_pad)        # gather scratch
    vmem_limit = int(min(max(4 * tile_bytes + (8 << 20), 32 << 20), 64 << 20))

    kernel = _make_embedding_kernel(tb, n_cat)
    out_padded = pl.pallas_call(
        kernel,
        out_shape=jax.ShapeDtypeStruct((b, out_pad), jnp.float32),
        grid_spec=pltpu.PrefetchScalarGridSpec(
            num_scalar_prefetch=1,
            grid=grid,
            in_specs=[
                pl.BlockSpec((tb, input_length), lambda i, gref: (i, 0)),
                pl.BlockSpec(memory_space=pl.ANY),        # table stays in HBM
                pl.BlockSpec((input_length, out_pad), lambda i, gref: (0, 0)),
                pl.BlockSpec((1, out_pad), lambda i, gref: (0, 0)),
                pl.BlockSpec((1, out_pad), lambda i, gref: (0, 0)),
            ],
            out_specs=pl.BlockSpec((tb, out_pad), lambda i, gref: (i, 0)),
            scratch_shapes=[
                pltpu.VMEM((n_cat, tb, out_pad), jnp.float32),
                pltpu.SemaphoreType.DMA((n_cat, tb)),
            ],
        ),
        compiler_params=pltpu.CompilerParams(
            dimension_semantics=("parallel",),
            vmem_limit_bytes=vmem_limit,
        ),
    )(gids, x.astype(jnp.float32), jnp.asarray(table_pad),
      jnp.asarray(cont_sel), scale_pad, shift_pad)

    return out_padded[:, :out_dim]


def embedding_reference(x, emb_tables, gamma, beta, cat_idxes, cont_idxes):
    """Pure-JAX reference implementing the same forward semantics."""
    cat_outs = []
    for i, col in enumerate(cat_idxes):
        idx = x[:, col].astype(jnp.int32)
        cat_outs.append(emb_tables[i][idx])
    cat = jnp.concatenate(cat_outs, axis=1)
    xc = x[:, jnp.array(cont_idxes)]
    mean = xc.mean(axis=0, keepdims=True)
    var = ((xc - mean) ** 2).mean(axis=0, keepdims=True)
    cont = (xc - mean) / jnp.sqrt(var + BN_EPS) * gamma + beta
    return jnp.concatenate([cat, cont], axis=1)


if __name__ == "__main__":
    # Module config (small, deterministic).
    input_length = 8
    cat_idxes = [1, 3, 5]
    cat_size_dict = {1: 10, 3: 7, 5: 12}
    cat_dim_dict = {i: embedding_dim_rule(s) for i, s in cat_size_dict.items()}
    cont_idxes = sorted(set(range(input_length)) - set(cat_idxes))
    batch = 32

    key = jax.random.PRNGKey(0)
    k_tbl, k_cont, k_cat = jax.random.split(key, 3)

    # nn.Embedding default init: N(0, 1).
    emb_tables = []
    tbl_keys = jax.random.split(k_tbl, len(cat_idxes))
    for kk, idx in zip(tbl_keys, cat_idxes):
        emb_tables.append(jax.random.normal(
            kk, (cat_size_dict[idx], cat_dim_dict[idx]), dtype=jnp.float32))

    # BatchNorm1d default affine params.
    gamma = jnp.ones((1, len(cont_idxes)), dtype=jnp.float32)
    beta = jnp.zeros((1, len(cont_idxes)), dtype=jnp.float32)

    # x: continuous columns ~ N(0,1); categorical columns hold valid ids.
    x = jax.random.normal(k_cont, (batch, input_length), dtype=jnp.float32)
    cat_keys = jax.random.split(k_cat, len(cat_idxes))
    for kk, idx in zip(cat_keys, cat_idxes):
        ids = jax.random.randint(kk, (batch,), 0, cat_size_dict[idx])
        x = x.at[:, idx].set(ids.astype(jnp.float32))

    # block_b=16 -> 2 batch tiles, exercises the parallel grid + pipelining.
    out = embedding_forward(x, emb_tables, gamma, beta, cat_idxes, cont_idxes,
                            block_b=16)
    out = jax.block_until_ready(out)

    ref = embedding_reference(x, emb_tables, gamma, beta, cat_idxes, cont_idxes)
    assert out.shape == (batch, sum(cat_dim_dict.values()) + len(cont_idxes))
    assert jnp.allclose(out, ref, atol=1e-5, rtol=1e-5), "mismatch vs reference"

    print("KERNEL_OK")
</pallas_src>

<mosaic_0001>
module attributes {stable_mosaic.version = 11 : i64} {
  func.func @kernel(%arg0: i32, %arg1: memref<96xi32, #tpu.memory_space<smem>>, %arg2: memref<16x8xf32, #tpu.memory_space<vmem>>, %arg3: memref<29x128xf32, #tpu.memory_space<any>>, %arg4: memref<8x128xf32, #tpu.memory_space<vmem>>, %arg5: memref<1x128xf32, #tpu.memory_space<vmem>>, %arg6: memref<1x128xf32, #tpu.memory_space<vmem>>, %arg7: memref<16x128xf32, #tpu.memory_space<vmem>>, %arg8: memref<3x16x128xf32, #tpu.memory_space<vmem>>, %arg9: memref<3x16x!tpu.dma_semaphore, #tpu.memory_space<semaphore_mem>>) attributes {dimension_semantics = [#tpu.dimension_semantics<parallel>], iteration_bounds = array<i64: 2>, scalar_prefetch = 1 : i64, scratch_operands = 2 : i64, tpu.core_type = #tpu.core_type<tc>, window_params = [{transform_indices = @transform_0, window_bounds = array<i64: 16, 8>}, {}, {pipeline_mode = #tpu.pipeline_mode<synchronous>, transform_indices = @transform_2, window_bounds = array<i64: 8, 128>}, {pipeline_mode = #tpu.pipeline_mode<synchronous>, transform_indices = @transform_3, window_bounds = array<i64: 1, 128>}, {pipeline_mode = #tpu.pipeline_mode<synchronous>, transform_indices = @transform_4, window_bounds = array<i64: 1, 128>}, {transform_indices = @transform_5, window_bounds = array<i64: 16, 128>}]} {
    %c16_i32 = arith.constant 16 : i32
    %0 = arith.muli %arg0, %c16_i32 : i32
    %c0_i32 = arith.constant 0 : i32
    %c16_i32_0 = arith.constant 16 : i32
    %1 = arith.addi %c0_i32, %c16_i32_0 : i32
    %c1_i32 = arith.constant 1 : i32
    scf.for %arg10 = %c0_i32 to %1 step %c1_i32  : i32 {
      %c1_i32_38 = arith.constant 1 : i32
      %26 = arith.muli %arg10, %c1_i32_38 : i32
      %c0_i32_39 = arith.constant 0 : i32
      %27 = arith.addi %c0_i32_39, %26 : i32
      %28 = arith.addi %0, %27 : i32
      %c3_i32 = arith.constant 3 : i32
      %29 = arith.muli %28, %c3_i32 : i32
      %c0_i32_40 = arith.constant 0 : i32
      %30 = arith.addi %29, %c0_i32_40 : i32
      %31 = arith.index_cast %30 : i32 to index
      %32 = memref.load %arg1[%31] : memref<96xi32, #tpu.memory_space<smem>>
      %c0_i32_41 = arith.constant 0 : i32
      %c0_i32_42 = arith.constant 0 : i32
      %c0_i32_43 = arith.constant 0 : i32
      %33 = tpu.memref_slice %arg3[%32, %c0_i32_43] : memref<29x128xf32, #tpu.memory_space<any>> -> memref<1x128xf32, #tpu.memory_space<any>>
      %c0_i32_44 = arith.constant 0 : i32
      %34 = tpu.memref_slice %arg8[%c0_i32_41, %27, %c0_i32_44] : memref<3x16x128xf32, #tpu.memory_space<vmem>> -> memref<1x1x128xf32, #tpu.memory_space<vmem>>
      %35 = tpu.memref_squeeze %34 : memref<1x1x128xf32, #tpu.memory_space<vmem>> -> memref<1x128xf32, #tpu.memory_space<vmem>>
      %36 = tpu.memref_slice %arg9[%c0_i32_42, %27] : memref<3x16x!tpu.dma_semaphore, #tpu.memory_space<semaphore_mem>> -> memref<1x1x!tpu.dma_semaphore, #tpu.memory_space<semaphore_mem>>
      %37 = tpu.memref_squeeze %36 : memref<1x1x!tpu.dma_semaphore, #tpu.memory_space<semaphore_mem>> -> memref<!tpu.dma_semaphore, #tpu.memory_space<semaphore_mem>>
      tpu.enqueue_dma source(%33 : memref<1x128xf32, #tpu.memory_space<any>>) target(%35 : memref<1x128xf32, #tpu.memory_space<vmem>>) target_semaphore(%37 : memref<!tpu.dma_semaphore, #tpu.memory_space<semaphore_mem>>)
    }
    %c16_i32_1 = arith.constant 16 : i32
    %c0_i32_2 = arith.constant 0 : i32
    %c16_i32_3 = arith.constant 16 : i32
    %2 = arith.addi %c0_i32_2, %c16_i32_3 : i32
    %c1_i32_4 = arith.constant 1 : i32
    scf.for %arg10 = %c0_i32_2 to %2 step %c1_i32_4  : i32 {
      %c1_i32_38 = arith.constant 1 : i32
      %26 = arith.muli %arg10, %c1_i32_38 : i32
      %c0_i32_39 = arith.constant 0 : i32
      %27 = arith.addi %c0_i32_39, %26 : i32
      %28 = arith.addi %0, %27 : i32
      %c3_i32 = arith.constant 3 : i32
      %29 = arith.muli %28, %c3_i32 : i32
      %c1_i32_40 = arith.constant 1 : i32
      %30 = arith.addi %29, %c1_i32_40 : i32
      %31 = arith.index_cast %30 : i32 to index
      %32 = memref.load %arg1[%31] : memref<96xi32, #tpu.memory_space<smem>>
      %c1_i32_41 = arith.constant 1 : i32
      %c1_i32_42 = arith.constant 1 : i32
      %c0_i32_43 = arith.constant 0 : i32
      %33 = tpu.memref_slice %arg3[%32, %c0_i32_43] : memref<29x128xf32, #tpu.memory_space<any>> -> memref<1x128xf32, #tpu.memory_space<any>>
      %c0_i32_44 = arith.constant 0 : i32
      %34 = tpu.memref_slice %arg8[%c1_i32_41, %27, %c0_i32_44] : memref<3x16x128xf32, #tpu.memory_space<vmem>> -> memref<1x1x128xf32, #tpu.memory_space<vmem>>
      %35 = tpu.memref_squeeze %34 : memref<1x1x128xf32, #tpu.memory_space<vmem>> -> memref<1x128xf32, #tpu.memory_space<vmem>>
      %36 = tpu.memref_slice %arg9[%c1_i32_42, %27] : memref<3x16x!tpu.dma_semaphore, #tpu.memory_space<semaphore_mem>> -> memref<1x1x!tpu.dma_semaphore, #tpu.memory_space<semaphore_mem>>
      %37 = tpu.memref_squeeze %36 : memref<1x1x!tpu.dma_semaphore, #tpu.memory_space<semaphore_mem>> -> memref<!tpu.dma_semaphore, #tpu.memory_space<semaphore_mem>>
      tpu.enqueue_dma source(%33 : memref<1x128xf32, #tpu.memory_space<any>>) target(%35 : memref<1x128xf32, #tpu.memory_space<vmem>>) target_semaphore(%37 : memref<!tpu.dma_semaphore, #tpu.memory_space<semaphore_mem>>)
    }
    %c16_i32_5 = arith.constant 16 : i32
    %c0_i32_6 = arith.constant 0 : i32
    %c16_i32_7 = arith.constant 16 : i32
    %3 = arith.addi %c0_i32_6, %c16_i32_7 : i32
    %c1_i32_8 = arith.constant 1 : i32
    scf.for %arg10 = %c0_i32_6 to %3 step %c1_i32_8  : i32 {
      %c1_i32_38 = arith.constant 1 : i32
      %26 = arith.muli %arg10, %c1_i32_38 : i32
      %c0_i32_39 = arith.constant 0 : i32
      %27 = arith.addi %c0_i32_39, %26 : i32
      %28 = arith.addi %0, %27 : i32
      %c3_i32 = arith.constant 3 : i32
      %29 = arith.muli %28, %c3_i32 : i32
      %c2_i32 = arith.constant 2 : i32
      %30 = arith.addi %29, %c2_i32 : i32
      %31 = arith.index_cast %30 : i32 to index
      %32 = memref.load %arg1[%31] : memref<96xi32, #tpu.memory_space<smem>>
      %c2_i32_40 = arith.constant 2 : i32
      %c2_i32_41 = arith.constant 2 : i32
      %c0_i32_42 = arith.constant 0 : i32
      %33 = tpu.memref_slice %arg3[%32, %c0_i32_42] : memref<29x128xf32, #tpu.memory_space<any>> -> memref<1x128xf32, #tpu.memory_space<any>>
      %c0_i32_43 = arith.constant 0 : i32
      %34 = tpu.memref_slice %arg8[%c2_i32_40, %27, %c0_i32_43] : memref<3x16x128xf32, #tpu.memory_space<vmem>> -> memref<1x1x128xf32, #tpu.memory_space<vmem>>
      %35 = tpu.memref_squeeze %34 : memref<1x1x128xf32, #tpu.memory_space<vmem>> -> memref<1x128xf32, #tpu.memory_space<vmem>>
      %36 = tpu.memref_slice %arg9[%c2_i32_41, %27] : memref<3x16x!tpu.dma_semaphore, #tpu.memory_space<semaphore_mem>> -> memref<1x1x!tpu.dma_semaphore, #tpu.memory_space<semaphore_mem>>
      %37 = tpu.memref_squeeze %36 : memref<1x1x!tpu.dma_semaphore, #tpu.memory_space<semaphore_mem>> -> memref<!tpu.dma_semaphore, #tpu.memory_space<semaphore_mem>>
      tpu.enqueue_dma source(%33 : memref<1x128xf32, #tpu.memory_space<any>>) target(%35 : memref<1x128xf32, #tpu.memory_space<vmem>>) target_semaphore(%37 : memref<!tpu.dma_semaphore, #tpu.memory_space<semaphore_mem>>)
    }
    %c16_i32_9 = arith.constant 16 : i32
    %c0 = arith.constant 0 : index
    %c0_10 = arith.constant 0 : index
    %4 = vector.load %arg2[%c0, %c0_10] : memref<16x8xf32, #tpu.memory_space<vmem>>, vector<16x8xf32>
    %c0_11 = arith.constant 0 : index
    %c0_12 = arith.constant 0 : index
    %5 = vector.load %arg4[%c0_11, %c0_12] : memref<8x128xf32, #tpu.memory_space<vmem>>, vector<8x128xf32>
    %cst = arith.constant dense<0.000000e+00> : vector<16x128xf32>
    %6 = tpu.matmul %4, %5, %cst {dimension_numbers = #tpu.dot_dimension_numbers<[1], [0], [0], [1], [0, 0, 1, 1], [], []>} : vector<16x8xf32>, vector<8x128xf32>, vector<16x128xf32> -> vector<16x128xf32>
    %c0_13 = arith.constant 0 : index
    %c0_14 = arith.constant 0 : index
    %7 = vector.load %arg5[%c0_13, %c0_14] : memref<1x128xf32, #tpu.memory_space<vmem>>, vector<1x128xf32>
    %8 = vector.broadcast %7 : vector<1x128xf32> to vector<16x128xf32>
    %9 = arith.mulf %6, %8 : vector<16x128xf32>
    %c0_15 = arith.constant 0 : index
    %c0_16 = arith.constant 0 : index
    %10 = vector.load %arg6[%c0_15, %c0_16] : memref<1x128xf32, #tpu.memory_space<vmem>>, vector<1x128xf32>
    %11 = vector.broadcast %10 : vector<1x128xf32> to vector<16x128xf32>
    %12 = arith.addf %9, %11 : vector<16x128xf32>
    %c0_i32_17 = arith.constant 0 : i32
    %c16_i32_18 = arith.constant 16 : i32
    %13 = arith.addi %c0_i32_17, %c16_i32_18 : i32
    %c1_i32_19 = arith.constant 1 : i32
    scf.for %arg10 = %c0_i32_17 to %13 step %c1_i32_19  : i32 {
      %c1_i32_38 = arith.constant 1 : i32
      %26 = arith.muli %arg10, %c1_i32_38 : i32
      %c0_i32_39 = arith.constant 0 : i32
      %27 = arith.addi %c0_i32_39, %26 : i32
      %c0_i32_40 = arith.constant 0 : i32
      %c0_i32_41 = arith.constant 0 : i32
      %c0_i32_42 = arith.constant 0 : i32
      %c0_i32_43 = arith.constant 0 : i32
      %28 = tpu.memref_slice %arg3[%c0_i32_42, %c0_i32_43] : memref<29x128xf32, #tpu.memory_space<any>> -> memref<1x128xf32, #tpu.memory_space<any>>
      %c0_i32_44 = arith.constant 0 : i32
      %29 = tpu.memref_slice %arg8[%c0_i32_40, %27, %c0_i32_44] : memref<3x16x128xf32, #tpu.memory_space<vmem>> -> memref<1x1x128xf32, #tpu.memory_space<vmem>>
      %30 = tpu.memref_squeeze %29 : memref<1x1x128xf32, #tpu.memory_space<vmem>> -> memref<1x128xf32, #tpu.memory_space<vmem>>
      %31 = tpu.memref_slice %arg9[%c0_i32_41, %27] : memref<3x16x!tpu.dma_semaphore, #tpu.memory_space<semaphore_mem>> -> memref<1x1x!tpu.dma_semaphore, #tpu.memory_space<semaphore_mem>>
      %32 = tpu.memref_squeeze %31 : memref<1x1x!tpu.dma_semaphore, #tpu.memory_space<semaphore_mem>> -> memref<!tpu.dma_semaphore, #tpu.memory_space<semaphore_mem>>
      tpu.wait_dma2 semaphore(%32 : memref<!tpu.dma_semaphore, #tpu.memory_space<semaphore_mem>>) src(%28 : memref<1x128xf32, #tpu.memory_space<any>>) dst(%30 : memref<1x128xf32, #tpu.memory_space<vmem>>)
    }
    %c16_i32_20 = arith.constant 16 : i32
    %c0_i32_21 = arith.constant 0 : i32
    %c16_i32_22 = arith.constant 16 : i32
    %14 = arith.addi %c0_i32_21, %c16_i32_22 : i32
    %c1_i32_23 = arith.constant 1 : i32
    scf.for %arg10 = %c0_i32_21 to %14 step %c1_i32_23  : i32 {
      %c1_i32_38 = arith.constant 1 : i32
      %26 = arith.muli %arg10, %c1_i32_38 : i32
      %c0_i32_39 = arith.constant 0 : i32
      %27 = arith.addi %c0_i32_39, %26 : i32
      %c1_i32_40 = arith.constant 1 : i32
      %c1_i32_41 = arith.constant 1 : i32
      %c0_i32_42 = arith.constant 0 : i32
      %c0_i32_43 = arith.constant 0 : i32
      %28 = tpu.memref_slice %arg3[%c0_i32_42, %c0_i32_43] : memref<29x128xf32, #tpu.memory_space<any>> -> memref<1x128xf32, #tpu.memory_space<any>>
      %c0_i32_44 = arith.constant 0 : i32
      %29 = tpu.memref_slice %arg8[%c1_i32_40, %27, %c0_i32_44] : memref<3x16x128xf32, #tpu.memory_space<vmem>> -> memref<1x1x128xf32, #tpu.memory_space<vmem>>
      %30 = tpu.memref_squeeze %29 : memref<1x1x128xf32, #tpu.memory_space<vmem>> -> memref<1x128xf32, #tpu.memory_space<vmem>>
      %31 = tpu.memref_slice %arg9[%c1_i32_41, %27] : memref<3x16x!tpu.dma_semaphore, #tpu.memory_space<semaphore_mem>> -> memref<1x1x!tpu.dma_semaphore, #tpu.memory_space<semaphore_mem>>
      %32 = tpu.memref_squeeze %31 : memref<1x1x!tpu.dma_semaphore, #tpu.memory_space<semaphore_mem>> -> memref<!tpu.dma_semaphore, #tpu.memory_space<semaphore_mem>>
      tpu.wait_dma2 semaphore(%32 : memref<!tpu.dma_semaphore, #tpu.memory_space<semaphore_mem>>) src(%28 : memref<1x128xf32, #tpu.memory_space<any>>) dst(%30 : memref<1x128xf32, #tpu.memory_space<vmem>>)
    }
    %c16_i32_24 = arith.constant 16 : i32
    %c0_i32_25 = arith.constant 0 : i32
    %c16_i32_26 = arith.constant 16 : i32
    %15 = arith.addi %c0_i32_25, %c16_i32_26 : i32
    %c1_i32_27 = arith.constant 1 : i32
    scf.for %arg10 = %c0_i32_25 to %15 step %c1_i32_27  : i32 {
      %c1_i32_38 = arith.constant 1 : i32
      %26 = arith.muli %arg10, %c1_i32_38 : i32
      %c0_i32_39 = arith.constant 0 : i32
      %27 = arith.addi %c0_i32_39, %26 : i32
      %c2_i32 = arith.constant 2 : i32
      %c2_i32_40 = arith.constant 2 : i32
      %c0_i32_41 = arith.constant 0 : i32
      %c0_i32_42 = arith.constant 0 : i32
      %28 = tpu.memref_slice %arg3[%c0_i32_41, %c0_i32_42] : memref<29x128xf32, #tpu.memory_space<any>> -> memref<1x128xf32, #tpu.memory_space<any>>
      %c0_i32_43 = arith.constant 0 : i32
      %29 = tpu.memref_slice %arg8[%c2_i32, %27, %c0_i32_43] : memref<3x16x128xf32, #tpu.memory_space<vmem>> -> memref<1x1x128xf32, #tpu.memory_space<vmem>>
      %30 = tpu.memref_squeeze %29 : memref<1x1x128xf32, #tpu.memory_space<vmem>> -> memref<1x128xf32, #tpu.memory_space<vmem>>
      %31 = tpu.memref_slice %arg9[%c2_i32_40, %27] : memref<3x16x!tpu.dma_semaphore, #tpu.memory_space<semaphore_mem>> -> memref<1x1x!tpu.dma_semaphore, #tpu.memory_space<semaphore_mem>>
      %32 = tpu.memref_squeeze %31 : memref<1x1x!tpu.dma_semaphore, #tpu.memory_space<semaphore_mem>> -> memref<!tpu.dma_semaphore, #tpu.memory_space<semaphore_mem>>
      tpu.wait_dma2 semaphore(%32 : memref<!tpu.dma_semaphore, #tpu.memory_space<semaphore_mem>>) src(%28 : memref<1x128xf32, #tpu.memory_space<any>>) dst(%30 : memref<1x128xf32, #tpu.memory_space<vmem>>)
    }
    %c16_i32_28 = arith.constant 16 : i32
    %c0_29 = arith.constant 0 : index
    %c0_30 = arith.constant 0 : index
    %c0_31 = arith.constant 0 : index
    %16 = vector.load %arg8[%c0_29, %c0_30, %c0_31] : memref<3x16x128xf32, #tpu.memory_space<vmem>>, vector<1x16x128xf32>
    %17 = vector.shape_cast %16 : vector<1x16x128xf32> to vector<16x128xf32>
    %c1 = arith.constant 1 : index
    %c0_32 = arith.constant 0 : index
    %c0_33 = arith.constant 0 : index
    %18 = vector.load %arg8[%c1, %c0_32, %c0_33] : memref<3x16x128xf32, #tpu.memory_space<vmem>>, vector<1x16x128xf32>
    %19 = vector.shape_cast %18 : vector<1x16x128xf32> to vector<16x128xf32>
    %20 = arith.addf %17, %19 : vector<16x128xf32>
    %c2 = arith.constant 2 : index
    %c0_34 = arith.constant 0 : index
    %c0_35 = arith.constant 0 : index
    %21 = vector.load %arg8[%c2, %c0_34, %c0_35] : memref<3x16x128xf32, #tpu.memory_space<vmem>>, vector<1x16x128xf32>
    %22 = vector.shape_cast %21 : vector<1x16x128xf32> to vector<16x128xf32>
    %23 = arith.addf %20, %22 : vector<16x128xf32>
    %24 = arith.addf %23, %12 : vector<16x128xf32>
    %c0_36 = arith.constant 0 : index
    %c0_37 = arith.constant 0 : index
    %25 = vector.load %arg7[%c0_36, %c0_37] : memref<16x128xf32, #tpu.memory_space<vmem>>, vector<16x128xf32>
    tpu.vector_store %arg7[%c0_36, %c0_37], %24 {strides = array<i32>} : memref<16x128xf32, #tpu.memory_space<vmem>>, vector<16x128xf32>,
    return
  }
  func.func @transform_0(%arg0: i32, %arg1: memref<96xi32, #tpu.memory_space<smem>>) -> (i32, i32) {
    %c0_i32 = arith.constant 0 : i32
    %c0_i32_0 = arith.constant 0 : i32
    return %arg0, %c0_i32 : i32, i32
  }
  func.func @transform_2(%arg0: i32, %arg1: memref<96xi32, #tpu.memory_space<smem>>) -> (i32, i32) {
    %c0_i32 = arith.constant 0 : i32
    %c0_i32_0 = arith.constant 0 : i32
    %c0_i32_1 = arith.constant 0 : i32
    return %c0_i32, %c0_i32_0 : i32, i32
  }
  func.func @transform_3(%arg0: i32, %arg1: memref<96xi32, #tpu.memory_space<smem>>) -> (i32, i32) {
    %c0_i32 = arith.constant 0 : i32
    %c0_i32_0 = arith.constant 0 : i32
    %c0_i32_1 = arith.constant 0 : i32
    return %c0_i32, %c0_i32_0 : i32, i32
  }
  func.func @transform_4(%arg0: i32, %arg1: memref<96xi32, #tpu.memory_space<smem>>) -> (i32, i32) {
    %c0_i32 = arith.constant 0 : i32
    %c0_i32_0 = arith.constant 0 : i32
    %c0_i32_1 = arith.constant 0 : i32
    return %c0_i32, %c0_i32_0 : i32, i32
  }
  func.func @transform_5(%arg0: i32, %arg1: memref<96xi32, #tpu.memory_space<smem>>) -> (i32, i32) {
    %c0_i32 = arith.constant 0 : i32
    %c0_i32_0 = arith.constant 0 : i32
    return %arg0, %c0_i32 : i32, i32
  }
}

</mosaic_0001>

<bundles_post_ra>
// kernel: tpu_custom_call.1
= control target key start
LH: loop header
LB: loop body
LE: loop exit
PB: predicated region body
PF: predicated region fallthrough
CT: control target
= control target key end

     0   :  { %s1209_s24 = smov [#allocation5]   ;;  %s1369_s0 = inlined_call_operand.vmem [shape: s32[96], index: 0, kind: input, shape index: {}]   ;;  %s1370_s1 = inlined_call_operand.vmem [shape: f32[32,8], index: 1, kind: input, shape index: {}]   ;;  %s1371_s2 = inlined_call_operand.vmem [shape: f32[29,128], index: 2, kind: input, shape index: {}]   ;;  %s1372_s3 = inlined_call_operand.vmem [shape: f32[8,128], index: 3, kind: input, shape index: {}]   ;;  %s1373_s4 = inlined_call_operand.vmem [shape: f32[1,128], index: 4, kind: input, shape index: {}]   ;;  %s1374_s5 = inlined_call_operand.vmem [shape: f32[1,128], index: 5, kind: input, shape index: {}]   ;;  %s1375_s6 = inlined_call_operand.hbm [shape: f32[32,128], index: 6, kind: output, shape index: {}]  }
   0x1   :  { %s12_s23 = sshll.u32 %s1369_s0, 4  ;;  %s13_s23 = int_to_ptr.vmem [resolvable:$true] %s12_s23 }
   0x2   :  { %15 = dma.vmem_to_smem %s13_s23, 16, %s1209_s24, [#allocation4] }
   0x3   :  { %1157 = dma.done.wait [#allocation4], 16 }
   0x4   :  { %1158 = vsyncadd [#allocation4], 4294967280 }
   0x5   :  { %18 = sfence }
   0x6   :  { %19 = vsyncpa [#allocation7], 0 }
   0x7   :  { %21 = vsyncpa [#allocation7 + $0x1], 0  ;;  %s1250_s25 = smov 0   ;;  %s1252_s26 = smov 0  }
   0x8   :  { %s1254_s27 = smov 0   ;;  %s1256_s28 = smov 0  }
   0x9 LB: > { %s917_s0 = sadd.s32 4294967295, %s1183_s28   ;;  %s918_s29 = sadd.s32 4294967294, %s1183_s28   ;;  %s1183_s28 = sphi %s1256_s28, %s1381_s28   ;;  %s1179_s27 = sphi %s1254_s27, %s1380_s27   ;;  %s1175_s26 = sphi %s1252_s26, %s1379_s26   ;;  %s1171_s25 = sphi %s1250_s25, %s1378_s25  }
   0xa   : > { %s1273_s30 = sadd.s32 1, %s1183_s28   ;;  %s123_s7 = sadd.s32 1, %s1179_s27 }
   0xb   : > { %s120_s8 = ssub.s32 %s1183_s28, %s1273_s30  ;;  %p133_p0 = scmp.ne.s32.totalorder %s1179_s27, %s1175_s26 }
   0xc   : > { %p121_p1 = scmp.eq.s32.totalorder %s120_s8, 0  ;;  %p134_p2 = scmp.eq.s32.totalorder %s917_s0, 1 }
   0xd   : > { %p139_p3 = scmp.ne.s32.totalorder %s1175_s26, %s1171_s25  ;;  %p140_p4 = scmp.eq.s32.totalorder %s918_s29, 1 }
   0xe   : > { %s1283_s9 = scalar_select %p121_p1, %s1179_s27, %s123_s7  }
   0xf   : > { %p1285_p5 = por %p134_p2, %p133_p0  ;;  %p1289_p6 = por %p140_p4, %p139_p3 }
  0x10   : > { %p921_p7 = scmp.ge.s32.totalorder %s1183_s28, 1  ;;  %p176_p8 = scmp.lt.s32.totalorder %s1183_s28, 3 }
  0x12   : > { %p177_p9 = pnand %p921_p7, %p176_p8 }
  0x13   : > { %s199_s12 = sand.u32 (!%p177_p9), 1, %s1175_s26   ;;  %s923_s13 = sshll.u32 (!%p177_p9), %s917_s0, 1 }
  0x14   : > { %180 = sbr.rel (%p177_p9) target bundleno = 256 (0x100), region = 36  ;;  %s922_s14 = sshll.u32 (!%p177_p9), %s199_s12, 4 }
  0x15   : > { %p203_p10 = scmp.lt.s32.totalorder (!%p177_p9), %s923_s13, 3  ;;  %s1298_s15 = sshll.u32 (!%p177_p9), %s917_s0, 4 }
  0x16   : > { %s1305_s20 = scalar_lea.vmem (!%p177_p9), [#allocation6], %s922_s14  ;;  %s1185_s21 = smov (!%p177_p9), 0  }
  0x19   : > { %s1383_s13 = smov (!%p203_p10, %s923_s13), 3 }
  0x1a   : > { %s924_s16 = sshll.u32 %s1383_s13, 3 }
  0x1b   : > { %s1303_s19 = scalar_lea.vmem %s1370_s1, %s924_s16 }
  0x1c LB: >> { %s216_s22 = sadd.s32 %s1187_s21, %s1298_s15  ;;  %s220_s8 = scalar_lea.vmem [#allocation2], %s1187_s21  ;;  %s1187_s21 = sphi %s1185_s21, %s215_s21  }
  0x1d   : >> { %s217_s23 = smul.u32 3, %s216_s22  ;;  %s221_s13 = scalar_lea.sflag [#allocation3], %s1187_s21 }
  0x1f   : >> { %s218_s24 = sld [smem:[#allocation5 + %s217_s23]] }
  0x25   : >> { %s219_s7 = scalar_lea.vmem %s1371_s2, %s218_s24 }
  0x26   : >> { %v236_v0 = vld [vmem:[%s219_s7] sm:$0x1] }
  0x27   : >> { %237 = vst [vmem:[%s220_s8] sm:$0x1] %v236_v0 }
  0x28   : >> { %255 = vsyncadd %s221_s13, 16  ;;  %s215_s21 = sadd.s32 1, %s1187_s21  }
  0x29   : >> { %p212_p11 = scmp.ge.s32.totalorder %s215_s21, 16  }
  0x2a   : > { %s1189_s14 = smov (%p212_p11), 0  }
  0x2b   : > { %214 = sbr.rel (!%p212_p11) target bundleno = 28 (0x1c), region = 276 }
  0x30 LB: >> { %s262_s16 = sadd.s32 %s1191_s14, %s1298_s15  ;;  %s835_s18 = scalar_lea.sflag [#allocation3], %s1191_s14  ;;  %s1191_s14 = sphi %s1189_s14, %s261_s14  }
  0x31   : >> { %s263_s17 = smul.u32 3, %s262_s16  ;;  %s836_s22 = scalar_lea.sflag %s835_s18, 16 [#allocation3] }
  0x32   : >> { %s833_s8 = scalar_lea.vmem [#allocation2], %s1191_s14 }
  0x33   : >> { %s264_s23 = sadd.s32 1, %s263_s17 }
  0x34   : >> { %s265_s24 = sld [smem:[#allocation5 + %s264_s23]] }
  0x3a   : >> { %s266_s7 = scalar_lea.vmem %s1371_s2, %s265_s24 }
  0x3b   : >> { %v284_v1 = vld [vmem:[%s266_s7] sm:$0x1] }
  0x3c   : >> { %926 = vst [vmem:[%s833_s8 + $0x10] sm:$0x1] %v284_v1 }
  0x3d   : >> { %303 = vsyncadd %s836_s22, 16  ;;  %s261_s14 = sadd.s32 1, %s1191_s14  }
  0x3e   : >> { %p258_p12 = scmp.ge.s32.totalorder %s261_s14, 16  }
  0x3f   : > { %s1193_s21 = smov (%p258_p12), 0  }
  0x40   : > { %260 = sbr.rel (!%p258_p12) target bundleno = 48 (0x30), region = 287 }
  0x45 LB: >> { %s310_s13 = sadd.s32 %s1195_s21, %s1298_s15  ;;  %s840_s17 = scalar_lea.sflag [#allocation3], %s1195_s21  ;;  %s1195_s21 = sphi %s1193_s21, %s309_s21  }
  0x46   : >> { %s311_s16 = smul.u32 3, %s310_s13  ;;  %s841_s18 = scalar_lea.sflag %s840_s17, 32 [#allocation3] }
  0x47   : >> { %s838_s22 = scalar_lea.vmem [#allocation2], %s1195_s21 }
  0x48   : >> { %s312_s23 = sadd.s32 2, %s311_s16 }
  0x49   : >> { %s313_s29 = sld [smem:[#allocation5 + %s312_s23]] }
  0x4f   : >> { %s314_s7 = scalar_lea.vmem %s1371_s2, %s313_s29 }
  0x50   : >> { %v332_v2 = vld [vmem:[%s314_s7] sm:$0x1] }
  0x51   : >> { %927 = vst [vmem:[%s838_s22 + $0x20] sm:$0x1] %v332_v2 }
  0x52   : >> { %351 = vsyncadd %s841_s18, 16  ;;  %s309_s21 = sadd.s32 1, %s1195_s21  }
  0x53   : >> { %p306_p13 = scmp.ge.s32.totalorder %s309_s21, 16  }
  0x54   : > { %v354_v3 = vld [vmem:[%s1372_s3] sm:$0xff] (%p306_p13)  ;;  %vm355_vm0 = vcmask (%p306_p13), 64512   ;;  %v353_v5 = vld [vmem:[%s1303_s19 + $0x8] sm:$0xff] (%p306_p13)  ;;  %s1197_s18 = smov (%p306_p13), 0  }
  0x55   : > { %308 = sbr.rel (!%p306_p13) target bundleno = 69 (0x45), region = 298  ;;  %v352_v4 = vld [vmem:[%s1303_s19] sm:$0xff] (%p306_p13)  ;;  %377 = vmatpush.msra.mxu0 (%p306_p13), %v354_v3  ;;  %984 = vmatpush.msra.mxu1 (%p306_p13), %v354_v3 }
  0x56   : > { %928 = vmatmul.msk.f32.vlgmr.msra.gmra.mxu0 (%p306_p13), %vm355_vm0, %v352_v4  ;;  %929 = vmatmul.msk.f32.vlgmr.msra.gmra.mxu1 (%p306_p13), %vm355_vm0, %v353_v5  ;;  %v1075_v6 = vld [vmem:[%s1373_s4] ss:$0 sm:$0xff] (%p306_p13) }
  0x57   : > { %v1076_v7 = vld [vmem:[%s1374_s5] ss:$0 sm:$0xff] (%p306_p13) }
  0xd3   : > { %v379_v8 = vpop.f32.mrf.mxu0  ;;  %v382_v9 = vpop.f32.mrf.mxu1 }
  0xd4   : > { %v389_v10 = vmul.f32 %v1075_v6, %v379_v8  ;;  %v390_v11 = vmul.f32 %v1075_v6, %v382_v9 }
  0xd6   : > { %v395_v12 = vadd.f32 %v1076_v7, %v389_v10  ;;  %v396_v13 = vadd.f32 %v1076_v7, %v390_v11 }
  0xd7 LB: >> { %s403_s19 = scalar_lea.sflag [#allocation3], %s1199_s18  ;;  %s1199_s18 = sphi %s1197_s18, %s402_s18  }
  0xd8   : >> { %1159 = dma.done.wait %s403_s19, 16 }
  0xd9   : >> { %1160 = vsyncadd %s403_s19, 4294967280  ;;  %s402_s18 = sadd.s32 1, %s1199_s18  }
  0xda   : >> { %p399_p0 = scmp.ge.s32.totalorder %s402_s18, 16  }
  0xdb   : > { %s1201_s23 = smov (%p399_p0), 0  }
  0xdc   : > { %401 = sbr.rel (!%p399_p0) target bundleno = 215 (0xd7), region = 309 }
  0xe1 LB: >> { %s843_s29 = scalar_lea.sflag [#allocation3], %s1203_s23  ;;  %s1203_s23 = sphi %s1201_s23, %s412_s23  }
  0xe2   : >> { %s844_s24 = scalar_lea.sflag %s843_s29, 16 [#allocation3] }
  0xe3   : >> { %1161 = dma.done.wait %s844_s24, 16 }
  0xe4   : >> { %1162 = vsyncadd %s844_s24, 4294967280  ;;  %s412_s23 = sadd.s32 1, %s1203_s23  }
  0xe5   : >> { %p409_p1 = scmp.ge.s32.totalorder %s412_s23, 16  }
  0xe6   : > { %s1205_s0 = smov (%p409_p1), 0  }
  0xe7   : > { %411 = sbr.rel (!%p409_p1) target bundleno = 225 (0xe1), region = 320 }
  0xec LB: >> { %s845_s7 = scalar_lea.sflag [#allocation3], %s1207_s0  ;;  %s1207_s0 = sphi %s1205_s0, %s423_s0  }
  0xed   : >> { %s846_s22 = scalar_lea.sflag %s845_s7, 32 [#allocation3] }
  0xee   : >> { %1163 = dma.done.wait %s846_s22, 16 }
  0xef   : >> { %1164 = vsyncadd %s846_s22, 4294967280  ;;  %s423_s0 = sadd.s32 1, %s1207_s0  }
  0xf0   : >> { %p420_p2 = scmp.ge.s32.totalorder %s423_s0, 16  }
  0xf1   : > { %v429_v14 = vld [vmem:[#allocation2] sm:$0xff] (%p420_p2)  ;;  %v432_v15 = vld [vmem:[#allocation2 + $0x10] sm:$0xff] (%p420_p2)  ;;  %s457_s13 = scalar_lea.hbm (%p420_p2), %s1375_s6, %s1298_s15  ;;  %v430_v18 = vld [vmem:[#allocation2 + $0x8] sm:$0xff] (%p420_p2)  ;;  %s458_s16 = sshll.u32 (%p420_p2), %s1305_s20, 4  ;;  %s459_s16 = int_to_ptr.vmem [resolvable:$true] %s458_s16 }
  0xf2   : > { %422 = sbr.rel (!%p420_p2) target bundleno = 236 (0xec), region = 331  ;;  %v437_v16 = vld [vmem:[#allocation2 + $0x20] sm:$0xff] (%p420_p2)  ;;  %v434_v17 = vadd.f32 (%p420_p2), %v432_v15, %v429_v14  ;;  %v433_v19 = vld [vmem:[#allocation2 + $0x18] sm:$0xff] (%p420_p2)  ;;  %v438_v20 = vld [vmem:[#allocation2 + $0x28] sm:$0xff] (%p420_p2)  ;;  %s1335_s17 = sshll.u32 (%p420_p2), %s457_s13, 4  ;;  %s461_s17 = int_to_ptr.hbm [resolvable:$true] %s1335_s17 }
  0xf3   : > { %v435_v21 = vadd.f32 (%p420_p2), %v433_v19, %v430_v18  ;;  %s446_s15 = scalar_lea.sflag (%p420_p2), [#allocation7], %s199_s12  ;;  %s1103_s21 = sshra.s32 (%p420_p2), %s461_s17, 4  ;;  %s1104_s21 = int_to_ptr.hbm [resolvable:$true] %s1103_s21 }
  0xf4   : > { %v439_v22 = vadd.f32 (%p420_p2), %v437_v16, %v434_v17  ;;  %s1105_s18 = scalar_lea.hbm (%p420_p2), %s1104_s21, 16  ;;  %s1109_s29 = scalar_lea.hbm (%p420_p2), %s1375_s6, 32 }
  0xf5   : > { %v440_v23 = vadd.f32 (%p420_p2), %v438_v20, %v435_v21  ;;  %p1106_p3 = scmp.ne.s32.totalorder (%p420_p2), %s1104_s21, %s1105_s18  ;;  %p1110_p8 = scmp.lt.s32.totalorder (%p420_p2), %s1104_s21, %s1375_s6 }
  0xf6   : > { %v441_v24 = vadd.f32 (%p420_p2), %v439_v22, %v395_v12  ;;  %p1111_p9 = scmp.lt.s32.totalorder (%p420_p2), %s1109_s29, %s1105_s18 }
  0xf7   : > { %v442_v25 = vadd.f32 %v440_v23, %v396_v13  ;;  %p1107_p4 = pnand %p1106_p3, %p1285_p5 }
  0xf8   : > { %443 = vst [vmem:[%s1305_s20] sm:$0xff] %v441_v24  ;;  %p1112_p10 = por %p1111_p9, %p1110_p8 }
  0xf9   : > { %444 = vst [vmem:[%s1305_s20 + $0x8] sm:$0xff] %v442_v25  ;;  %p1108_p7 = pneg %p1107_p4 }
  0xfb   : > { %p1113_p11 = pnand %p1112_p10, %p1108_p7 }
  0xfd   : > { %1116 = shalt.err (!%p1113_p11)
}
  0xfe   : > { %s1210_s12 = smov 128   ;;  %s1211_s20 = smov 8  }
  0xff   : > { %985 = dma.vmem_to_hbm [thread:$0]  (%p1285_p5), %s459_s16, 256, %s461_s17, %s446_s15, %s1210_s12, %s1210_s12, %s1211_s20  }
 0x100 PF: > { %p991_p12 = scmp.ge.s32.totalorder %s1183_s28, 2  ;;  %s475_s7 = sand.u32 1, %s1171_s25  }
 0x101   : > { %s476_s22 = scalar_lea.sflag [#allocation7], %s475_s7 }
 0x102   : > { %p988_p13 = pnand %p991_p12, %p1289_p6 }
 0x104   : > { %p989_p0 = pneg %p988_p13 }
 0x106   : > { %1166 = dma.done.wait (%p989_p0), %s476_s22, 256  }
 0x107   : > { %1168 = vsyncadd (%p989_p0), %s476_s22, 4294967040  ;;  %p24_p1 = scmp.ge.s32.totalorder %s1273_s30, 4   ;;  %s1378_s25 = smov %s1175_s26 }
 0x108   : > { %s1379_s26 = smov %s1179_s27  ;;  %s1380_s27 = smov %s1283_s9 }
 0x109   : > { %s1381_s28 = smov %s1273_s30  ;;  %26 = sbr.rel (!%p24_p1) target bundleno = 9 (0x9), region = 342 }
 0x10e   :  { %482 = vsyncpa [#allocation7], 1 }
 0x10f   :  { %484 = vsyncpa [#allocation7 + $0x1], 1 }
 0x110   :  { %485 = vsyncmov [#allocation3] }
 0x113   :  { %s486_s28 = vpop.sfrf %485 }
 0x114   :  { %p935_p5 = scmp.ne.s32.totalorder %s486_s28, 0 }
 0x116   :  { %490 = shalt.err (%p935_p5)  }
 0x117   :  { %492 = vsyncmov [#allocation3 + $0x1] }
 0x11a   :  { %s493_s10 = vpop.sfrf %492 }
 0x11b   :  { %p936_p6 = scmp.ne.s32.totalorder %s493_s10, 0 }
 0x11d   :  { %497 = shalt.err (%p936_p6)  }
 0x11e   :  { %499 = vsyncmov [#allocation3 + $0x2] }
 0x121   :  { %s500_s11 = vpop.sfrf %499 }
 0x122   :  { %p937_p2 = scmp.ne.s32.totalorder %s500_s11, 0 }
 0x124   :  { %504 = shalt.err (%p937_p2)  }
 0x125   :  { %506 = vsyncmov [#allocation3 + $0x3] }
 0x128   :  { %s507_s14 = vpop.sfrf %506 }
 0x129   :  { %p938_p3 = scmp.ne.s32.totalorder %s507_s14, 0 }
 0x12b   :  { %511 = shalt.err (%p938_p3)  }
 0x12c   :  { %513 = vsyncmov [#allocation3 + $0x4] }
 0x12f   :  { %s514_s30 = vpop.sfrf %513 }
 0x130   :  { %p939_p4 = scmp.ne.s32.totalorder %s514_s30, 0 }
 0x132   :  { %518 = shalt.err (%p939_p4)  }
 0x133   :  { %520 = vsyncmov [#allocation3 + $0x5] }
 0x136   :  { %s521_s1 = vpop.sfrf %520 }
 0x137   :  { %p940_p7 = scmp.ne.s32.totalorder %s521_s1, 0 }
 0x139   :  { %525 = shalt.err (%p940_p7)  }
 0x13a   :  { %527 = vsyncmov [#allocation3 + $0x6] }
 0x13d   :  { %s528_s2 = vpop.sfrf %527 }
 0x13e   :  { %p941_p8 = scmp.ne.s32.totalorder %s528_s2, 0 }
 0x140   :  { %532 = shalt.err (%p941_p8)  }
 0x141   :  { %534 = vsyncmov [#allocation3 + $0x7] }
 0x144   :  { %s535_s3 = vpop.sfrf %534 }
 0x145   :  { %p942_p9 = scmp.ne.s32.totalorder %s535_s3, 0 }
 0x147   :  { %539 = shalt.err (%p942_p9)  }
 0x148   :  { %541 = vsyncmov [#allocation3 + $0x8] }
 0x14b   :  { %s542_s4 = vpop.sfrf %541 }
 0x14c   :  { %p943_p10 = scmp.ne.s32.totalorder %s542_s4, 0 }
 0x14e   :  { %546 = shalt.err (%p943_p10)  }
 0x14f   :  { %548 = vsyncmov [#allocation3 + $0x9] }
 0x152   :  { %s549_s5 = vpop.sfrf %548 }
 0x153   :  { %p944_p11 = scmp.ne.s32.totalorder %s549_s5, 0 }
 0x155   :  { %553 = shalt.err (%p944_p11)  }
 0x156   :  { %555 = vsyncmov [#allocation3 + $0xa] }
 0x159   :  { %s556_s6 = vpop.sfrf %555 }
 0x15a   :  { %p945_p12 = scmp.ne.s32.totalorder %s556_s6, 0 }
 0x15c   :  { %560 = shalt.err (%p945_p12)  }
 0x15d   :  { %562 = vsyncmov [#allocation3 + $0xb] }
 0x160   :  { %s563_s25 = vpop.sfrf %562 }
 0x161   :  { %p946_p13 = scmp.ne.s32.totalorder %s563_s25, 0 }
 0x163   :  { %567 = shalt.err (%p946_p13)  }
 0x164   :  { %569 = vsyncmov [#allocation3 + $0xc] }
 0x167   :  { %s570_s26 = vpop.sfrf %569 }
 0x168   :  { %p947_p0 = scmp.ne.s32.totalorder %s570_s26, 0 }
 0x16a   :  { %574 = shalt.err (%p947_p0)  }
 0x16b   :  { %576 = vsyncmov [#allocation3 + $0xd] }
 0x16e   :  { %s577_s27 = vpop.sfrf %576 }
 0x16f   :  { %p948_p1 = scmp.ne.s32.totalorder %s577_s27, 0 }
 0x171   :  { %581 = shalt.err (%p948_p1)  }
 0x172   :  { %583 = vsyncmov [#allocation3 + $0xe] }
 0x175   :  { %s584_s9 = vpop.sfrf %583 }
 0x176   :  { %p949_p5 = scmp.ne.s32.totalorder %s584_s9, 0 }
 0x178   :  { %588 = shalt.err (%p949_p5)  }
 0x179   :  { %590 = vsyncmov [#allocation3 + $0xf] }
 0x17c   :  { %s591_s8 = vpop.sfrf %590 }
 0x17d   :  { %p950_p6 = scmp.ne.s32.totalorder %s591_s8, 0 }
 0x17f   :  { %595 = shalt.err (%p950_p6)  }
 0x180   :  { %597 = vsyncmov [#allocation3 + $0x10] }
 0x183   :  { %s598_s13 = vpop.sfrf %597 }
 0x184   :  { %p951_p2 = scmp.ne.s32.totalorder %s598_s13, 0 }
 0x186   :  { %602 = shalt.err (%p951_p2)  }
 0x187   :  { %604 = vsyncmov [#allocation3 + $0x11] }
 0x18a   :  { %s605_s16 = vpop.sfrf %604 }
 0x18b   :  { %p952_p3 = scmp.ne.s32.totalorder %s605_s16, 0 }
 0x18d   :  { %609 = shalt.err (%p952_p3)  }
 0x18e   :  { %611 = vsyncmov [#allocation3 + $0x12] }
 0x191   :  { %s612_s17 = vpop.sfrf %611 }
 0x192   :  { %p953_p4 = scmp.ne.s32.totalorder %s612_s17, 0 }
 0x194   :  { %616 = shalt.err (%p953_p4)  }
 0x195   :  { %618 = vsyncmov [#allocation3 + $0x13] }
 0x198   :  { %s619_s15 = vpop.sfrf %618 }
 0x199   :  { %p954_p7 = scmp.ne.s32.totalorder %s619_s15, 0 }
 0x19b   :  { %623 = shalt.err (%p954_p7)  }
 0x19c   :  { %625 = vsyncmov [#allocation3 + $0x14] }
 0x19f   :  { %s626_s21 = vpop.sfrf %625 }
 0x1a0   :  { %p955_p8 = scmp.ne.s32.totalorder %s626_s21, 0 }
 0x1a2   :  { %630 = shalt.err (%p955_p8)  }
 0x1a3   :  { %632 = vsyncmov [#allocation3 + $0x15] }
 0x1a6   :  { %s633_s18 = vpop.sfrf %632 }
 0x1a7   :  { %p956_p9 = scmp.ne.s32.totalorder %s633_s18, 0 }
 0x1a9   :  { %637 = shalt.err (%p956_p9)  }
 0x1aa   :  { %639 = vsyncmov [#allocation3 + $0x16] }
 0x1ad   :  { %s640_s19 = vpop.sfrf %639 }
 0x1ae   :  { %p957_p10 = scmp.ne.s32.totalorder %s640_s19, 0 }
 0x1b0   :  { %644 = shalt.err (%p957_p10)  }
 0x1b1   :  { %646 = vsyncmov [#allocation3 + $0x17] }
 0x1b4   :  { %s647_s23 = vpop.sfrf %646 }
 0x1b5   :  { %p958_p11 = scmp.ne.s32.totalorder %s647_s23, 0 }
 0x1b7   :  { %651 = shalt.err (%p958_p11)  }
 0x1b8   :  { %653 = vsyncmov [#allocation3 + $0x18] }
 0x1bb   :  { %s654_s29 = vpop.sfrf %653 }
 0x1bc   :  { %p959_p12 = scmp.ne.s32.totalorder %s654_s29, 0 }
 0x1be   :  { %658 = shalt.err (%p959_p12)  }
 0x1bf   :  { %660 = vsyncmov [#allocation3 + $0x19] }
 0x1c2   :  { %s661_s24 = vpop.sfrf %660 }
 0x1c3   :  { %p960_p13 = scmp.ne.s32.totalorder %s661_s24, 0 }
 0x1c5   :  { %665 = shalt.err (%p960_p13)  }
 0x1c6   :  { %667 = vsyncmov [#allocation3 + $0x1a] }
 0x1c9   :  { %s668_s0 = vpop.sfrf %667 }
 0x1ca   :  { %p961_p0 = scmp.ne.s32.totalorder %s668_s0, 0 }
 0x1cc   :  { %672 = shalt.err (%p961_p0)  }
 0x1cd   :  { %674 = vsyncmov [#allocation3 + $0x1b] }
 0x1d0   :  { %s675_s12 = vpop.sfrf %674 }
 0x1d1   :  { %p962_p1 = scmp.ne.s32.totalorder %s675_s12, 0 }
 0x1d3   :  { %679 = shalt.err (%p962_p1)  }
 0x1d4   :  { %681 = vsyncmov [#allocation3 + $0x1c] }
 0x1d7   :  { %s682_s20 = vpop.sfrf %681 }
 0x1d8   :  { %p963_p5 = scmp.ne.s32.totalorder %s682_s20, 0 }
 0x1da   :  { %686 = shalt.err (%p963_p5)  }
 0x1db   :  { %688 = vsyncmov [#allocation3 + $0x1d] }
 0x1de   :  { %s689_s7 = vpop.sfrf %688 }
 0x1df   :  { %p964_p6 = scmp.ne.s32.totalorder %s689_s7, 0 }
 0x1e1   :  { %693 = shalt.err (%p964_p6)  }
 0x1e2   :  { %695 = vsyncmov [#allocation3 + $0x1e] }
 0x1e5   :  { %s696_s22 = vpop.sfrf %695 }
 0x1e6   :  { %p965_p2 = scmp.ne.s32.totalorder %s696_s22, 0 }
 0x1e8   :  { %700 = shalt.err (%p965_p2)  }
 0x1e9   :  { %702 = vsyncmov [#allocation3 + $0x1f] }
 0x1ec   :  { %s703_s28 = vpop.sfrf %702 }
 0x1ed   :  { %p966_p3 = scmp.ne.s32.totalorder %s703_s28, 0 }
 0x1ef   :  { %707 = shalt.err (%p966_p3)  }
 0x1f0   :  { %709 = vsyncmov [#allocation3 + $0x20] }
 0x1f3   :  { %s710_s10 = vpop.sfrf %709 }
 0x1f4   :  { %p967_p4 = scmp.ne.s32.totalorder %s710_s10, 0 }
 0x1f6   :  { %714 = shalt.err (%p967_p4)  }
 0x1f7   :  { %716 = vsyncmov [#allocation3 + $0x21] }
 0x1fa   :  { %s717_s11 = vpop.sfrf %716 }
 0x1fb   :  { %p968_p7 = scmp.ne.s32.totalorder %s717_s11, 0 }
 0x1fd   :  { %721 = shalt.err (%p968_p7)  }
 0x1fe   :  { %723 = vsyncmov [#allocation3 + $0x22] }
 0x201   :  { %s724_s14 = vpop.sfrf %723 }
 0x202   :  { %p969_p8 = scmp.ne.s32.totalorder %s724_s14, 0 }
 0x204   :  { %728 = shalt.err (%p969_p8)  }
 0x205   :  { %730 = vsyncmov [#allocation3 + $0x23] }
 0x208   :  { %s731_s30 = vpop.sfrf %730 }
 0x209   :  { %p970_p9 = scmp.ne.s32.totalorder %s731_s30, 0 }
 0x20b   :  { %735 = shalt.err (%p970_p9)  }
 0x20c   :  { %737 = vsyncmov [#allocation3 + $0x24] }
 0x20f   :  { %s738_s1 = vpop.sfrf %737 }
 0x210   :  { %p971_p10 = scmp.ne.s32.totalorder %s738_s1, 0 }
 0x212   :  { %742 = shalt.err (%p971_p10)  }
 0x213   :  { %744 = vsyncmov [#allocation3 + $0x25] }
 0x216   :  { %s745_s2 = vpop.sfrf %744 }
 0x217   :  { %p972_p11 = scmp.ne.s32.totalorder %s745_s2, 0 }
 0x219   :  { %749 = shalt.err (%p972_p11)  }
 0x21a   :  { %751 = vsyncmov [#allocation3 + $0x26] }
 0x21d   :  { %s752_s3 = vpop.sfrf %751 }
 0x21e   :  { %p973_p12 = scmp.ne.s32.totalorder %s752_s3, 0 }
 0x220   :  { %756 = shalt.err (%p973_p12)  }
 0x221   :  { %758 = vsyncmov [#allocation3 + $0x27] }
 0x224   :  { %s759_s4 = vpop.sfrf %758 }
 0x225   :  { %p974_p13 = scmp.ne.s32.totalorder %s759_s4, 0 }
 0x227   :  { %763 = shalt.err (%p974_p13)  }
 0x228   :  { %765 = vsyncmov [#allocation3 + $0x28] }
 0x22b   :  { %s766_s5 = vpop.sfrf %765 }
 0x22c   :  { %p975_p0 = scmp.ne.s32.totalorder %s766_s5, 0 }
 0x22e   :  { %770 = shalt.err (%p975_p0)  }
 0x22f   :  { %772 = vsyncmov [#allocation3 + $0x29] }
 0x232   :  { %s773_s6 = vpop.sfrf %772 }
 0x233   :  { %p976_p1 = scmp.ne.s32.totalorder %s773_s6, 0 }
 0x235   :  { %777 = shalt.err (%p976_p1)  }
 0x236   :  { %779 = vsyncmov [#allocation3 + $0x2a] }
 0x239   :  { %s780_s25 = vpop.sfrf %779 }
 0x23a   :  { %p977_p5 = scmp.ne.s32.totalorder %s780_s25, 0 }
 0x23c   :  { %784 = shalt.err (%p977_p5)  }
 0x23d   :  { %786 = vsyncmov [#allocation3 + $0x2b] }
 0x240   :  { %s787_s26 = vpop.sfrf %786 }
 0x241   :  { %p978_p6 = scmp.ne.s32.totalorder %s787_s26, 0 }
 0x243   :  { %791 = shalt.err (%p978_p6)  }
 0x244   :  { %793 = vsyncmov [#allocation3 + $0x2c] }
 0x247   :  { %s794_s27 = vpop.sfrf %793 }
 0x248   :  { %p979_p2 = scmp.ne.s32.totalorder %s794_s27, 0 }
 0x24a   :  { %798 = shalt.err (%p979_p2)  }
 0x24b   :  { %800 = vsyncmov [#allocation3 + $0x2d] }
 0x24e   :  { %s801_s9 = vpop.sfrf %800 }
 0x24f   :  { %p980_p3 = scmp.ne.s32.totalorder %s801_s9, 0 }
 0x251   :  { %805 = shalt.err (%p980_p3)  }
 0x252   :  { %807 = vsyncmov [#allocation3 + $0x2e] }
 0x255   :  { %s808_s8 = vpop.sfrf %807 }
 0x256   :  { %p981_p4 = scmp.ne.s32.totalorder %s808_s8, 0 }
 0x258   :  { %812 = shalt.err (%p981_p4)  }
 0x259   :  { %814 = vsyncmov [#allocation3 + $0x2f] }
 0x25c   :  { %s815_s13 = vpop.sfrf %814 }
 0x25d   :  { %p982_p7 = scmp.ne.s32.totalorder %s815_s13, 0 }
 0x25f   :  { %819 = shalt.err (%p982_p7)  }

</bundles_post_ra>
